<compile_context>
chip_gen: v7x
topology: tpu7x:2x2x1
jax: 0.10.0
libtpu: 0.0.40
codegen_flags: <defaults>
</compile_context>

<pallas_src>
import functools

import numpy as np

import jax
import jax.numpy as jnp
from jax.experimental import pallas as pl
from jax.experimental.pallas import tpu as pltpu


def _ode_euler_kernel(dt_ref, kmap_ref, cnt_ref, adj_ref, x_ref, out_ref, acc_ref,
                      *, tm, tk):
    """out[i] = x0[i] + dt * sum_over_nonzero_k( adj[i, k] @ x[k] ).

    Grid: (N // tm, k_max) with the compacted reduction axis last.
      adj_ref : (tm, tk) bf16 tile of adjacency, selected by kmap[i, s]
      x_ref   : (N, D) VMEM-resident embeddings (matmul operand + residual source)
      acc_ref : (tm, D) f32 accumulator
    """
    i = pl.program_id(0)
    s = pl.program_id(1)

    @pl.when(s == 0)
    def _():
        acc_ref[...] = jnp.zeros_like(acc_ref)

    # Only the first cnt[i] entries of the compacted k-list are real nonzero blocks.
    @pl.when(s < cnt_ref[i])
    def _():
        kb = kmap_ref[i, s]
        xk = x_ref[pl.ds(pl.multiple_of(kb * tk, tk), tk), :]
        acc_ref[...] += jnp.dot(
            adj_ref[...].astype(jnp.float32),   # exact: adjacency is 0/1 in bf16
            xk.astype(jnp.float32),
            preferred_element_type=jnp.float32,
        )

    @pl.when(s == pl.num_programs(1) - 1)
    def _():
        x0 = x_ref[pl.ds(pl.multiple_of(i * tm, tm), tm), :]
        out_ref[...] = (
            x0.astype(jnp.float32) + dt_ref[0] * acc_ref[...]
        ).astype(out_ref.dtype)


def _pick_tile(n, candidates, min_blocks=1):
    for c in candidates:
        if n % c == 0 and n // c >= min_blocks:
            return c
    for c in candidates:
        if n % c == 0:
            return c
    return n


def precompute_block_sparsity(adj, tm, tk):
    """Host-side (NumPy) per-row-block list of nonzero k-blocks.

    Returns (kmap, cnt, k_max):
      kmap : (gi, k_max) int32, nonzero k-block indices, padded by repeating the
             last valid entry (=> adj index_map revisits the block, no extra DMA).
      cnt  : (gi,) int32, number of valid entries per row-block.
      k_max: static grid extent for the compacted reduction axis (>= 1).

    Compute this ONCE for a static graph and pass it to ode_block_forward.
    """
    a = np.asarray(adj)
    n_rows, n_cols = a.shape
    gi, gk = n_rows // tm, n_cols // tk
    blk = a.reshape(gi, tm, gk, tk).any(axis=(1, 3))          # (gi, gk) bool
    cnt = blk.sum(axis=1).astype(np.int32)                    # (gi,)
    k_max = max(int(cnt.max()) if cnt.size else 0, 1)
    kmap = np.zeros((gi, k_max), dtype=np.int32)
    for i in range(gi):
        nz = np.flatnonzero(blk[i]).astype(np.int32)
        if nz.size:
            kmap[i, :nz.size] = nz
            kmap[i, nz.size:] = nz[-1]
    return jnp.asarray(kmap), jnp.asarray(cnt), k_max


def ode_block_forward(x, adj, start, end, *, solver="euler", tm=None, tk=None,
                      block_sparsity=None):
    """ODEBlock.forward with fixed-step Euler solver (single step over [start, end])."""
    assert solver == "euler", "only fixed-step euler implemented"
    # TODO(synk): adaptive 'dopri5' (data-dependent step control) has no clean
    #             static-grid Pallas equivalent; fixed-step euler matches the
    #             torchdiffeq default grid (t = [start, end]) exactly.
    N, D = x.shape
    assert adj.shape == (N, N)

    # --- tile selection (keep N//tm >= 2 so the parallel i-axis shards across
    #     v7x's two TensorCores; v5e/v6e are unaffected).
    if tm is None:
        tm = _pick_tile(N, (512, 256, 128, 64, 32, 16, 8), min_blocks=2)
    if tk is None:
        tk = _pick_tile(N, (1024, 512, 256, 128, 64, 32, 16, 8))
    assert N % tm == 0 and N % tk == 0
    # TODO(synk): pad N up to a tile multiple for arbitrary (non-divisible) node counts.

    gi, gk = N // tm, N // tk

    # x stays fully VMEM-resident inside the kernel.
    x_bytes = N * D * x.dtype.itemsize
    assert x_bytes <= (8 << 20), "x too large for VMEM residency"
    # TODO(synk): stream (tk, D)/(tm, D) x tiles when the embedding table exceeds ~8 MiB.

    # --- block-sparsity metadata: compute once per static graph (host NumPy),
    #     reuse across calls via the `block_sparsity` argument.
    if block_sparsity is None:
        block_sparsity = precompute_block_sparsity(adj, tm, tk)
    kmap, cnt, k_max = block_sparsity
    assert kmap.shape == (gi, k_max) and cnt.shape == (gi,)

    # --- narrow the dominant HBM stream: 0/1 adjacency is exact in bf16.
    adj_bf16 = adj.astype(jnp.bfloat16)

    dt = (jnp.asarray(end) - jnp.asarray(start)).astype(jnp.float32).reshape(1)

    # --- explicit VMEM budget (v5e scoped default is only 16 MiB; v7x physical is 64 MiB).
    need = (2 * tm * tk * adj_bf16.dtype.itemsize      # double-buffered adj tiles
            + 2 * N * D * x.dtype.itemsize             # resident x
            + 2 * tm * D * x.dtype.itemsize            # out tiles
            + tm * D * 4)                              # f32 accumulator
    vmem_limit = int(min(max(2 * need, 32 << 20), 64 << 20))

    nnz_blocks = int(np.asarray(cnt).sum())
    cost = pl.CostEstimate(
        flops=2 * nnz_blocks * tm * tk * D,
        transcendentals=0,
        bytes_accessed=nnz_blocks * tm * tk * adj_bf16.dtype.itemsize
        + 2 * N * D * x.dtype.itemsize,
    )

    out = pl.pallas_call(
        functools.partial(_ode_euler_kernel, tm=tm, tk=tk),
        out_shape=jax.ShapeDtypeStruct((N, D), x.dtype),
        grid_spec=pltpu.PrefetchScalarGridSpec(
            num_scalar_prefetch=3,                      # dt, kmap, cnt -> SMEM
            grid=(gi, k_max),                           # reduction (compacted k) axis last
            in_specs=[
                # adjacency tile, data-dependent block index via the compacted k-list
                pl.BlockSpec((tm, tk), lambda i, s, dt, kmap, cnt: (i, kmap[i, s])),
                # embeddings: single full-array VMEM-resident block
                pl.BlockSpec((N, D), lambda i, s, dt, kmap, cnt: (0, 0)),
            ],
            out_specs=pl.BlockSpec((tm, D), lambda i, s, dt, kmap, cnt: (i, 0)),
            scratch_shapes=[pltpu.VMEM((tm, D), jnp.float32)],
        ),
        compiler_params=pltpu.CompilerParams(
            dimension_semantics=("parallel", "arbitrary"),
            vmem_limit_bytes=vmem_limit,
        ),
        cost_estimate=cost,
    )(dt, kmap, cnt, adj_bf16, x)
    return out


def _reference(x, adj, start, end):
    dt = (end - start).astype(jnp.float32)
    ax = jnp.dot(adj.astype(jnp.float32), x.astype(jnp.float32),
                 preferred_element_type=jnp.float32)
    return (x.astype(jnp.float32) + dt * ax).astype(x.dtype)


if __name__ == "__main__":
    key = jax.random.PRNGKey(0)
    k_adj, k_x = jax.random.split(key)

    N, D = 256, 128  # nodes, embedding dim (small synthetic graph)

    # Deterministic synthetic graph: symmetric 0/1 adjacency, no self-loops
    # (LGConv(normalize=False) = plain sum-aggregation => dense A @ x).
    a = (jax.random.uniform(k_adj, (N, N)) < 0.05).astype(jnp.float32)
    adj = jnp.maximum(a, a.T) * (1.0 - jnp.eye(N, dtype=jnp.float32))

    # Node embeddings (y0 of the ODE).
    x = jax.random.normal(k_x, (N, D), dtype=jnp.float32) * 0.1

    start = jnp.array(0.0, dtype=jnp.float32)
    end = jnp.array(1.0, dtype=jnp.float32)

    out = ode_block_forward(x, adj, start, end, solver="euler")
    out = jax.block_until_ready(out)

    ref = _reference(x, adj, start, end)
    assert out.shape == (N, D) and out.dtype == x.dtype
    assert jnp.allclose(out, ref, atol=1e-3, rtol=1e-3)

    print("KERNEL_OK")
</pallas_src>

<mosaic_0001>
module attributes {stable_mosaic.version = 11 : i64} {
  func.func @_ode_euler_kernel(%arg0: i32, %arg1: i32, %arg2: memref<1xf32, #tpu.memory_space<smem>>, %arg3: memref<2x1xi32, #tpu.memory_space<smem>>, %arg4: memref<2xi32, #tpu.memory_space<smem>>, %arg5: memref<128x256xbf16, #tpu.memory_space<vmem>>, %arg6: memref<256x128xf32, #tpu.memory_space<vmem>>, %arg7: memref<128x128xf32, #tpu.memory_space<vmem>>, %arg8: memref<128x128xf32, #tpu.memory_space<vmem>>) attributes {dimension_semantics = [#tpu.dimension_semantics<parallel>, #tpu.dimension_semantics<arbitrary>], iteration_bounds = array<i64: 2, 1>, scalar_prefetch = 3 : i64, scratch_operands = 1 : i64, tpu.core_type = #tpu.core_type<tc>, window_params = [{transform_indices = @transform_0, window_bounds = array<i64: 128, 256>}, {pipeline_mode = #tpu.pipeline_mode<synchronous>, transform_indices = @transform_1, window_bounds = array<i64: 256, 128>}, {transform_indices = @transform_2, window_bounds = array<i64: 128, 128>}]} {
    %c0_i32 = arith.constant 0 : i32
    %0 = arith.cmpi eq, %arg1, %c0_i32 : i32
    %1 = arith.extui %0 : i1 to i32
    %c0_i32_0 = arith.constant 0 : i32
    %2 = arith.cmpi ne, %1, %c0_i32_0 : i32
    scf.if %2 {
      %cst = arith.constant 0.000000e+00 : f32
      %11 = vector.broadcast %cst : f32 to vector<128x128xf32>
      %c0 = arith.constant 0 : index
      %c0_4 = arith.constant 0 : index
      %12 = vector.load %arg8[%c0, %c0_4] : memref<128x128xf32, #tpu.memory_space<vmem>>, vector<128x128xf32>
      tpu.vector_store %arg8[%c0, %c0_4], %11 {strides = array<i32>} : memref<128x128xf32, #tpu.memory_space<vmem>>, vector<128x128xf32>,
    } else {
    }
    %3 = arith.index_cast %arg0 : i32 to index
    %4 = memref.load %arg4[%3] : memref<2xi32, #tpu.memory_space<smem>>
    %5 = arith.cmpi slt, %arg1, %4 : i32
    %6 = arith.extui %5 : i1 to i32
    %c0_i32_1 = arith.constant 0 : i32
    %7 = arith.cmpi ne, %6, %c0_i32_1 : i32
    scf.if %7 {
      %11 = arith.index_cast %arg0 : i32 to index
      %12 = arith.index_cast %arg1 : i32 to index
      %13 = memref.load %arg3[%11, %12] : memref<2x1xi32, #tpu.memory_space<smem>>
      %c256_i32 = arith.constant 256 : i32
      %14 = arith.muli %13, %c256_i32 : i32
      %15 = tpu.assume_multiple %14, 256 : i32
      %16 = arith.index_cast %15 : i32 to index
      %c0 = arith.constant 0 : index
      %17 = vector.load %arg6[%16, %c0] : memref<256x128xf32, #tpu.memory_space<vmem>>, vector<256x128xf32>
      %c0_4 = arith.constant 0 : index
      %c0_5 = arith.constant 0 : index
      %18 = vector.load %arg8[%c0_4, %c0_5] : memref<128x128xf32, #tpu.memory_space<vmem>>, vector<128x128xf32>
      %c0_6 = arith.constant 0 : index
      %c0_7 = arith.constant 0 : index
      %19 = vector.load %arg5[%c0_6, %c0_7] : memref<128x256xbf16, #tpu.memory_space<vmem>>, vector<128x256xbf16>
      %20 = arith.extf %19 : vector<128x256xbf16> to vector<128x256xf32>
      %cst = arith.constant dense<0.000000e+00> : vector<128x128xf32>
      %21 = tpu.matmul %20, %17, %cst {dimension_numbers = #tpu.dot_dimension_numbers<[1], [0], [0], [1], [0, 0, 1, 1], [], []>} : vector<128x256xf32>, vector<256x128xf32>, vector<128x128xf32> -> vector<128x128xf32>
      %22 = arith.addf %18, %21 : vector<128x128xf32>
      %c0_8 = arith.constant 0 : index
      %c0_9 = arith.constant 0 : index
      %23 = vector.load %arg8[%c0_8, %c0_9] : memref<128x128xf32, #tpu.memory_space<vmem>>, vector<128x128xf32>
      tpu.vector_store %arg8[%c0_8, %c0_9], %22 {strides = array<i32>} : memref<128x128xf32, #tpu.memory_space<vmem>>, vector<128x128xf32>,
    } else {
    }
    %c0_i32_2 = arith.constant 0 : i32
    %8 = arith.cmpi eq, %arg1, %c0_i32_2 : i32
    %9 = arith.extui %8 : i1 to i32
    %c0_i32_3 = arith.constant 0 : i32
    %10 = arith.cmpi ne, %9, %c0_i32_3 : i32
    scf.if %10 {
      %c128_i32 = arith.constant 128 : i32
      %11 = arith.muli %arg0, %c128_i32 : i32
      %12 = tpu.assume_multiple %11, 128 : i32
      %13 = arith.index_cast %12 : i32 to index
      %c0 = arith.constant 0 : index
      %14 = vector.load %arg6[%13, %c0] : memref<256x128xf32, #tpu.memory_space<vmem>>, vector<128x128xf32>
      %c0_4 = arith.constant 0 : index
      %15 = memref.load %arg2[%c0_4] : memref<1xf32, #tpu.memory_space<smem>>
      %c0_5 = arith.constant 0 : index
      %c0_6 = arith.constant 0 : index
      %16 = vector.load %arg8[%c0_5, %c0_6] : memref<128x128xf32, #tpu.memory_space<vmem>>, vector<128x128xf32>
      %17 = vector.broadcast %15 : f32 to vector<128x128xf32>
      %18 = arith.mulf %17, %16 : vector<128x128xf32>
      %19 = arith.addf %14, %18 : vector<128x128xf32>
      %c0_7 = arith.constant 0 : index
      %c0_8 = arith.constant 0 : index
      %20 = vector.load %arg7[%c0_7, %c0_8] : memref<128x128xf32, #tpu.memory_space<vmem>>, vector<128x128xf32>
      tpu.vector_store %arg7[%c0_7, %c0_8], %19 {strides = array<i32>} : memref<128x128xf32, #tpu.memory_space<vmem>>, vector<128x128xf32>,
    } else {
    }
    return
  }
  func.func @transform_0(%arg0: i32, %arg1: i32, %arg2: memref<1xf32, #tpu.memory_space<smem>>, %arg3: memref<2x1xi32, #tpu.memory_space<smem>>, %arg4: memref<2xi32, #tpu.memory_space<smem>>) -> (i32, i32) {
    %0 = arith.index_cast %arg0 : i32 to index
    %1 = arith.index_cast %arg1 : i32 to index
    %2 = memref.load %arg3[%0, %1] : memref<2x1xi32, #tpu.memory_space<smem>>
    %c0_i32 = arith.constant 0 : i32
    return %arg0, %2 : i32, i32
  }
  func.func @transform_1(%arg0: i32, %arg1: i32, %arg2: memref<1xf32, #tpu.memory_space<smem>>, %arg3: memref<2x1xi32, #tpu.memory_space<smem>>, %arg4: memref<2xi32, #tpu.memory_space<smem>>) -> (i32, i32) {
    %c0_i32 = arith.constant 0 : i32
    %c0_i32_0 = arith.constant 0 : i32
    %c0_i32_1 = arith.constant 0 : i32
    return %c0_i32, %c0_i32_0 : i32, i32
  }
  func.func @transform_2(%arg0: i32, %arg1: i32, %arg2: memref<1xf32, #tpu.memory_space<smem>>, %arg3: memref<2x1xi32, #tpu.memory_space<smem>>, %arg4: memref<2xi32, #tpu.memory_space<smem>>) -> (i32, i32) {
    %c0_i32 = arith.constant 0 : i32
    %c0_i32_0 = arith.constant 0 : i32
    return %arg0, %c0_i32 : i32, i32
  }
}

</mosaic_0001>

<bundles_post_ra>
// kernel: tpu_custom_call.1
= control target key start
LH: loop header
LB: loop body
LE: loop exit
PB: predicated region body
PF: predicated region fallthrough
CT: control target
= control target key end

     0   :  { %s1615_s0 = inlined_call_operand.<no memory space> [shape: f32[1], index: 0, kind: input, shape index: {}]   ;;  %s1616_s1 = inlined_call_operand.vmem [shape: s32[2,1], index: 1, kind: input, shape index: {}]   ;;  %s1617_s3 = inlined_call_operand.hbm [shape: bf16[256,256], index: 3, kind: input, shape index: {}]   ;;  %s1618_s4 = inlined_call_operand.hbm [shape: f32[256,128], index: 4, kind: input, shape index: {}]   ;;  %s1619_s5 = inlined_call_operand.hbm [shape: f32[256,128], index: 5, kind: output, shape index: {}]   ;;  %s1620_s2 = inlined_call_operand.vmem [shape: s32[2], index: 2, kind: input, shape index: {}]  }
   0x1   :  { %1632 = sst [smem:[#allocation23_spill]] %s1618_s4  ;;  %s11_s22 = sshll.u32 %s1616_s1, 4  ;;  %s12_s22 = int_to_ptr.vmem [resolvable:$true] %s11_s22 }
   0x2   :  { %10 = sst [smem:[#allocation4]] %s1615_s0  ;;  %s15_s25 = sshll.u32 %s1620_s2, 4  ;;  %s16_s25 = int_to_ptr.vmem [resolvable:$true] %s15_s25 }
   0x3   :  { %s1015_s26 = scalar_lea.vmem %s12_s22, 32  ;;  %p1020_p1 = scmp.lt.s32.totalorder %s12_s22, %s12_s22 }
   0x4   :  { %p1016_p0 = scmp.ne.s32.totalorder %s12_s22, %s1015_s26  ;;  %p1021_p2 = scmp.lt.s32.totalorder %s1015_s26, %s1015_s26 }
   0x6   :  { %p1022_p3 = por %p1021_p2, %p1020_p1 }
   0x8   :  { %p1023_p4 = pnand %p1022_p3, %p1016_p0 }
   0xa   :  { %1026 = shalt.err (!%p1023_p4)  }
   0xb   :  { %s1211_s27 = smov [#allocation5]   ;;  %s1027_s0 = scalar_lea.vmem %s16_s25, 16 }
   0xc   :  { %14 = dma.vmem_to_smem %s12_s22, 32, %s1211_s27, [#allocation3] }
   0xd   :  { %p1028_p5 = scmp.ne.s32.totalorder %s16_s25, %s1027_s0  ;;  %p1032_p6 = scmp.lt.s32.totalorder %s16_s25, %s16_s25 }
   0xe   :  { %p1033_p7 = scmp.lt.s32.totalorder %s1027_s0, %s1027_s0 }
  0x10   :  { %p1034_p8 = por %p1033_p7, %p1032_p6 }
  0x12   :  { %p1035_p9 = pnand %p1034_p8, %p1028_p5 }
  0x14   :  { %1038 = shalt.err (!%p1035_p9)  }
  0x15   :  { %s1212_s1 = smov [#allocation6]  }
  0x16   :  { %18 = dma.vmem_to_smem %s16_s25, 16, %s1212_s1, [#allocation3] }
  0x17   :  { %1161 = dma.done.wait [#allocation3], 48 }
  0x18   :  { %1162 = vsyncadd [#allocation3], 4294967248 }
  0x19   :  { %20 = sfence }
  0x1a   :  { %21 = vsyncpa [#allocation8], 0 }
  0x1b   :  { %23 = vsyncpa [#allocation8 + $0x1], 0 }
  0x1c   :  { %24 = vsyncpa [#allocation11], 0 }
  0x1d   :  { %25 = vsyncpa [#allocation9], 0 }
  0x1e   :  { %27 = vsyncpa [#allocation9 + $0x1], 0  ;;  %s1260_s2 = smov 0   ;;  %s1262_s28 = smov 0  }
  0x1f   :  { %s1264_s29 = smov 0   ;;  %s1266_s30 = smov 0  }
  0x20   :  { %s1268_s6 = smov 0   ;;  %s1270_s7 = smov 0  }
  0x21   :  { %s1272_s8 = smov 0   ;;  %s1274_s9 = smov 0  }
  0x22   :  { %s1276_s10 = smov 0  }
  0x23 LB: > { %1633 = sst [smem:[#allocation19_spill]] %s1185_s29  ;;  %s750_s11 = sadd.s32 4294967295, %s1209_s10   ;;  %s1209_s10 = sphi %s1276_s10, %s33_s10   ;;  %s1205_s9 = sphi %s1274_s9, %s1664_s9   ;;  %s1201_s8 = sphi %s1272_s8, %s1663_s8   ;;  %s1197_s7 = sphi %s1270_s7, %s1662_s7   ;;  %s1193_s6 = sphi %s1268_s6, %s1661_s6   ;;  %s1189_s30 = sphi %s1266_s30, %s1660_s30   ;;  %s1185_s29 = sphi %s1264_s29, %s1656_s29   ;;  %s1181_s28 = sphi %s1262_s28, %s1659_s28   ;;  %s1177_s2 = sphi %s1260_s2, %s1658_s2  }
  0x24   : > { %1634 = sst [smem:[#allocation20_spill]] %s1209_s10  ;;  %s751_s12 = sadd.s32 4294967294, %s1209_s10  }
  0x25   : > { %p83_p10 = scmp.ne.s32.totalorder %s1193_s6, %s1189_s30  ;;  %p1306_p11 = scmp.eq.s32.totalorder %s750_s11, 0 }
  0x26   : > { %p127_p12 = scmp.ne.s32.totalorder %s1185_s29, %s1181_s28  ;;  %p128_p0 = scmp.eq.s32.totalorder %s750_s11, 1 }
  0x27   : > { %s1635_s13 = scalar_select %p1306_p11, 1, 0 }
  0x28   : > { %p1314_p13 = por %p1306_p11, %p83_p10  ;;  %p133_p1 = scmp.ne.s32.totalorder %s1181_s28, %s1177_s2 }
  0x29   : > { %p134_p2 = scmp.eq.s32.totalorder %s751_s12, 1  ;;  %p1320_p3 = por %p128_p0, %p127_p12 }
  0x2a   : > { %s1636_s14 = scalar_select %p1314_p13, 1, 0 }
  0x2b   : > { %s1637_s15 = scalar_select %p1320_p3, 1, 0 }
  0x2c   : > { %p754_p4 = scmp.ge.s32.totalorder %s1209_s10, 1  ;;  %p1325_p5 = por %p134_p2, %p133_p1 }
  0x2d   : > { %p141_p6 = scmp.lt.s32.totalorder %s1209_s10, 3  ;;  %s1213_s18 = smov [#allocation10]  }
  0x2e   : > { %s1638_s16 = scalar_select %p1325_p5, 1, 0 }
  0x2f   : > { %p1330_p7 = pnand %p754_p4, %p141_p6  ;;  %s153_s19 = sshll.u32 %s1213_s18, 4  ;;  %s154_s19 = int_to_ptr.vmem [resolvable:$true] %s153_s19 }
  0x30   : > { %s45_s21 = sadd.s32 1, %s1205_s9  ;;  %s1641_s4 = sld [smem:[#allocation23_spill]] }
  0x31   : > { %s1639_s17 = scalar_select %p1330_p7, 1, 0 }
  0x32   : > { %p917_p8 = pneg %p1330_p7 }
  0x34   : > { %p1339_p10 = pnand %p917_p8, %p1306_p11 }
  0x36   : > { %s1039_s24 = scalar_lea.hbm %s1641_s4, 4096  ;;  %p1041_p0 = pneg %p1339_p10 }
  0x37   : > { %p1040_p12 = scmp.ne.s32.totalorder %s1641_s4, %s1039_s24  ;;  %p1046_p4 = scmp.lt.u32.totalorder %s1039_s24, %s1641_s4 }
  0x39   : > { %p1042_p1 = pnand %p1041_p0, %p1040_p12 }
  0x3b   : > { %p1043_p2 = pneg %p1042_p1 }
  0x3d   : > { %p1048_p6 = pnand %p1046_p4, %p1043_p2 }
  0x3f   : > { %1051 = shalt.err (!%p1048_p6)
}
  0x40   : > { %s1052_s1 = scalar_lea.vmem %s154_s19, 4096  ;;  %p1060_p3 = scmp.lt.s32.totalorder %s154_s19, %s154_s19 }
  0x41   : > { %p1053_p8 = scmp.ne.s32.totalorder %s154_s19, %s1052_s1  ;;  %p1061_p11 = scmp.lt.s32.totalorder %s1052_s1, %s1052_s1 }
  0x43   : > { %p1055_p9 = pnand %p1053_p8, %p1041_p0  ;;  %p1062_p13 = por %p1061_p11, %p1060_p3 }
  0x45   : > { %p1056_p5 = pneg %p1055_p9 }
  0x47   : > { %p1063_p7 = pnand %p1062_p13, %p1056_p5 }
  0x49   : > { %1066 = shalt.err (!%p1063_p7)
}
  0x4a   : > { %s1626_s30 = smov 128   ;;  %s1627_s11 = smov 8  }
  0x4b   : > { %920 = dma.hbm_to_vmem [thread:$0]  (!%p1339_p10), %s1641_s4, 4096, %s154_s19, [#allocation11], %s1626_s30, %s1626_s30, %s1627_s11  }
  0x4c   : > { %p47_p11 = scmp.ge.s32.totalorder %s45_s21, 2  ;;  %s752_s22 = sshll.u32 %s1205_s9, 7 }
  0x4d   : > { %s56_s23 = sld [smem:[#allocation5 + %s752_s22]]  ;;  %p77_p13 = scmp.ne.s32.totalorder %s1197_s7, %s1193_s6 }
  0x4e   : > { %s1666_s21 = smov (%p47_p11, %s45_s21), 0  ;;  %p78_p3 = scmp.eq.s32.totalorder %s1209_s10, 0 }
  0x4f   : > { %1642 = sst [smem:[#allocation21_spill]] %s1666_s21  ;;  %s753_s24 = sshll.u32 %s1666_s21, 7 }
  0x50   : > { %s65_s20 = ssub.s32 %s1205_s9, %s1666_s21  ;;  %s117_s25 = sadd.s32 1, %s1185_s29 }
  0x51   : > { %s64_s26 = sld [smem:[#allocation5 + %s753_s24]]  ;;  %p115_p5 = scmp.eq.s32.totalorder %s65_s20, 0 }
  0x52   : > { %p1373_p7 = por %p78_p3, %p77_p13  ;;  %p932_p9 = scmp.lt.s32.totalorder %s1209_s10, 2 }
  0x53   : > { %s1379_s19 = scalar_select %p115_p5, %s1185_s29, %s117_s25  }
  0x54   : > { %s167_s0 = sand.u32 1, %s1197_s7   ;;  %p1384_p10 = pnand %p932_p9, %p1373_p7 }
  0x55   : > { %1644 = sst [smem:[#allocation22_spill]] %s1379_s19  ;;  %s70_s18 = sadd.s32 1, %s1197_s7 }
  0x56   : > { %s757_s30 = sshll.u32 %s167_s0, 7  ;;  %s1668_s22 = smov (!%p1373_p7, %s752_s22), 0 }
  0x57   : > { %s66_s12 = ssub.s32 %s56_s23, %s64_s26  ;;  %s1672_s22 = smov (!%p932_p9, %s1668_s22), 0 }
  0x58   : > { %s67_s24 = sor.u32 %s66_s12, %s65_s20  ;;  %s777_s21 = sshll.u32 %s1205_s9, 5 }
  0x59   : > { %p68_p12 = scmp.eq.s32.totalorder %s67_s24, 0  ;;  %s171_s19 = scalar_lea.vmem [#allocation7], %s757_s30 }
  0x5a   : > { %s909_s11 = scalar_select %p1373_p7, [#allocation5], [#allocation13] }
  0x5b   : > { %s1392_s4 = scalar_select %p68_p12, %s1197_s7, %s70_s18  }
  0x5c   : > { %s1670_s11 = smov (!%p932_p9, %s909_s11), [#allocation14]  ;;  %s189_s29 = sshll.u32 %s171_s19, 4  ;;  %s1397_s29 = int_to_ptr.vmem [resolvable:$true] %s189_s29 }
  0x5d   : > { %s179_s25 = sld [smem:[%s1670_s11 + %s1672_s22]]  ;;  %s1404_s27 = scalar_lea.sflag [#allocation8], %s167_s0 }
  0x5e   : > { %p1069_p1 = pneg %p1384_p10  ;;  %s1072_s30 = scalar_lea.hbm %s1617_s3, 4096 }
  0x63   : > { %s760_s10 = sshll.u32 %s179_s25, 1 }
  0x64   : > { %s186_s23 = sadd.s32 %s777_s21, %s760_s10 }
  0x65   : > { %s762_s20 = sshll.u32 %s186_s23, 6 }
  0x66   : > { %s1402_s18 = scalar_lea.hbm %s1617_s3, %s762_s20 }
  0x67   : > { %s1067_s11 = scalar_lea.hbm %s1402_s18, 2048  ;;  %p1073_p6 = scmp.lt.u32.totalorder %s1402_s18, %s1617_s3 }
  0x68   : > { %p1068_p0 = scmp.ne.s32.totalorder %s1402_s18, %s1067_s11  ;;  %p1074_p8 = scmp.lt.u32.totalorder %s1072_s30, %s1067_s11 }
  0x69   : > { %p1076_p13 = scmp.lt.u32.totalorder %s1067_s11, %s1402_s18 }
  0x6a   : > { %p1070_p2 = pnand %p1069_p1, %p1068_p0  ;;  %p1075_p11 = por %p1074_p8, %p1073_p6 }
  0x6c   : > { %p1071_p4 = pneg %p1070_p2  ;;  %p1077_p3 = por %p1076_p13, %p1075_p11 }
  0x6e   : > { %p1078_p5 = pnand %p1077_p3, %p1071_p4 }
  0x70   : > { %1081 = shalt.err (!%p1078_p5)
}
  0x71   : > { %s1082_s0 = scalar_lea.vmem %s1397_s29, 2048  ;;  %s1216_s24 = smov [#allocation7]  }
  0x72   : > { %p1083_p7 = scmp.ne.s32.totalorder %s1397_s29, %s1082_s0  ;;  %s1087_s25 = sshll.u32 %s1216_s24, 4  ;;  %s1088_s25 = int_to_ptr.vmem [resolvable:$false] %s1087_s25 }
  0x73   : > { %s1089_s23 = scalar_lea.vmem %s1088_s25, 4096  ;;  %p1090_p0 = scmp.lt.s32.totalorder %s1397_s29, %s1088_s25 }
  0x74   : > { %p1085_p9 = pnand %p1083_p7, %p1069_p1  ;;  %p1091_p2 = scmp.lt.s32.totalorder %s1089_s23, %s1082_s0 }
  0x76   : > { %p1086_p12 = pneg %p1085_p9  ;;  %p1092_p6 = por %p1091_p2, %p1090_p0 }
  0x78   : > { %p1093_p8 = pnand %p1092_p6, %p1086_p12 }
  0x7a   : > { %1096 = shalt.err (!%p1093_p8)
}
  0x7b   : > { %s1646_s20 = smov 8   ;;  %s1647_s26 = smov 128  }
  0x7c   : > { %926 = dma.hbm_to_vmem [thread:$0]  (!%p1384_p10), %s1402_s18, 2048, %s1397_s29, %s1404_s27, %s1647_s26, %s1647_s26, %s1646_s20  }
  0x7d   : > { %p1648_p1 = scmp.ne.s32.totalorder %s1639_s17, 0 }
  0x7e   : > { %s203_s12 = sand.u32 (!%p1648_p1), 1, %s1193_s6   ;;  %p1649_p4 = scmp.ne.s32.totalorder (!%p1648_p1), %s1636_s14, 0 }
  0x7f   : > { %201 = sbr.rel (%p1648_p1) target bundleno = 469 (0x1d5), region = 28  ;;  %s764_s11 = sshll.u32 (!%p1648_p1), %s203_s12, 7 }
  0x80   : > { %s204_s10 = scalar_lea.sflag (!%p1648_p1), [#allocation8], %s203_s12  ;;  %s1438_s21 = scalar_lea.vmem (!%p1648_p1), [#allocation7], %s764_s11 }
  0x86   : > { %1164 = dma.done.wait (%p1649_p4), %s204_s10, 2048  }
  0x87   : > { %1166 = vsyncadd (%p1649_p4), %s204_s10, 4294965248  ;;  %p1650_p11 = scmp.ne.s32.totalorder %s1635_s13, 0 }
  0x89   : > { %1168 = dma.done.wait (%p1650_p11), [#allocation11], 4096  }
  0x8a   : > { %1170 = vsyncadd (%p1650_p11), [#allocation11], 4294963200  ;;  %s229_s29 = sand.u32 1, %s1181_s28   ;;  %s263_s17 = sld [smem:[#allocation6 + %s1201_s8]]  ;;  %v1217_v0 = vmov 0.0  }
  0x8b   : > { %s766_s1 = sshll.u32 %s229_s29, 7  ;;  %247 = vst [vmem:[#allocation2] sm:$0xff] %v1217_v0  ;;  %248 = vst [vmem:[#allocation2 + $0x8] sm:$0xff] %v1217_v0 }
  0x8c   : > { %249 = vst [vmem:[#allocation2 + $0x10] sm:$0xff] %v1217_v0  ;;  %250 = vst [vmem:[#allocation2 + $0x18] sm:$0xff] %v1217_v0  ;;  %s1452_s13 = scalar_lea.vmem [#allocation12], %s766_s1 }
  0x8d   : > { %251 = vst [vmem:[#allocation2 + $0x20] sm:$0xff] %v1217_v0  ;;  %252 = vst [vmem:[#allocation2 + $0x28] sm:$0xff] %v1217_v0 }
  0x8e   : > { %253 = vst [vmem:[#allocation2 + $0x30] sm:$0xff] %v1217_v0  ;;  %254 = vst [vmem:[#allocation2 + $0x38] sm:$0xff] %v1217_v0 }
  0x8f   : > { %255 = vst [vmem:[#allocation2 + $0x40] sm:$0xff] %v1217_v0  ;;  %256 = vst [vmem:[#allocation2 + $0x48] sm:$0xff] %v1217_v0 }
  0x90   : > { %257 = vst [vmem:[#allocation2 + $0x50] sm:$0xff] %v1217_v0  ;;  %258 = vst [vmem:[#allocation2 + $0x58] sm:$0xff] %v1217_v0  ;;  %p768_p10 = scmp.le.s32.totalorder %s263_s17, 0 }
  0x91   : > { %259 = vst [vmem:[#allocation2 + $0x60] sm:$0xff] %v1217_v0  ;;  %260 = vst [vmem:[#allocation2 + $0x68] sm:$0xff] %v1217_v0  ;;  %s769_s14 = sshll.u32 (!%p768_p10), %s1201_s8, 7  ;;  %v1456_v1 = vld [vmem:[%s1438_s21] sm:$0xff] (!%p768_p10)  ;;  %v327_v53 = vld [vmem:[%s1438_s21 + $0x8] sm:$0xff] (!%p768_p10) }
  0x92   : > { %261 = vst [vmem:[#allocation2 + $0x70] sm:$0xff] %v1217_v0  ;;  %262 = vst [vmem:[#allocation2 + $0x78] sm:$0xff] %v1217_v0  ;;  %267 = sbr.rel (%p768_p10) target bundleno = 435 (0x1b3), region = 44  ;;  %v1459_v2 = vld [vmem:[%s1438_s21 + $0x40] sm:$0xff] (!%p768_p10)  ;;  %s275_s18 = sld [smem:[#allocation5 + %s769_s14]] (!%p768_p10)  ;;  %v343_v3 = vunpack.c.h.bf16 (!%p768_p10), %v1456_v1  ;;  %v335_v54 = vld [vmem:[%s1438_s21 + $0x48] sm:$0xff] (!%p768_p10)  ;;  %v342_v55 = vunpack.c.l.bf16 (!%p768_p10), %v1456_v1  ;;  %v345_v57 = vunpack.c.h.bf16 (!%p768_p10), %v327_v53  ;;  %v344_v61 = vunpack.c.l.bf16 (!%p768_p10), %v327_v53 }
  0x93   : > { %v359_v4 = vunpack.c.h.bf16 (!%p768_p10), %v1459_v2  ;;  %v358_v56 = vunpack.c.l.bf16 (!%p768_p10), %v1459_v2  ;;  %v361_v58 = vunpack.c.h.bf16 (!%p768_p10), %v335_v54  ;;  %v328_v59 = vld [vmem:[%s1438_s21 + $0x10] sm:$0xff] (!%p768_p10)  ;;  %v360_v62 = vunpack.c.l.bf16 (!%p768_p10), %v335_v54  ;;  %v329_v1 = vld [vmem:[%s1438_s21 + $0x18] sm:$0xff] (!%p768_p10) }
  0x94   : > { %438 = vmatprep.mubr.f32.mxu0 (!%p768_p10), %v343_v3  ;;  %v336_v60 = vld [vmem:[%s1438_s21 + $0x50] sm:$0xff] (!%p768_p10)  ;;  %v347_v63 = vunpack.c.h.bf16 (!%p768_p10), %v328_v59  ;;  %v337_v3 = vld [vmem:[%s1438_s21 + $0x58] sm:$0xff] (!%p768_p10)  ;;  %v346_v2 = vunpack.c.l.bf16 (!%p768_p10), %v328_v59 }
  0x95   : > { %478 = vmatprep.mubr.f32.mxu1 (!%p768_p10), %v359_v4  ;;  %v363_v0 = vunpack.c.h.bf16 (!%p768_p10), %v336_v60  ;;  %v362_v4 = vunpack.c.l.bf16 (!%p768_p10), %v336_v60 }
  0x98   : > { %s770_s27 = sshll.u32 (!%p768_p10), %s275_s18, 8 }
  0x99   : > { %s1463_s30 = scalar_lea.vmem [#allocation10], %s770_s27 }
  0x9a   : > { %v294_v5 = vld [vmem:[%s1463_s30 + $0x80] sm:$0xff]  ;;  %v295_v6 = vld [vmem:[%s1463_s30 + $0x88] sm:$0xff]  ;;  %v296_v10 = vld [vmem:[%s1463_s30 + $0x90] sm:$0xff] }
  0x9b   : > { %v278_v7 = vld [vmem:[%s1463_s30] sm:$0xff]  ;;  %v859_v8 = vpack.c.bf16 %v295_v6, %v294_v5  ;;  %v279_v9 = vld [vmem:[%s1463_s30 + $0x8] sm:$0xff]  ;;  %v297_v11 = vld [vmem:[%s1463_s30 + $0x98] sm:$0xff]  ;;  %v349_v5 = vunpack.c.h.bf16 %v329_v1  ;;  %v365_v6 = vunpack.c.h.bf16 %v337_v3 }
  0x9c   : > { %v861_v12 = vpack.c.bf16 %v279_v9, %v278_v7  ;;  %v863_v13 = vpack.c.bf16 %v297_v11, %v296_v10  ;;  %v280_v14 = vld [vmem:[%s1463_s30 + $0x10] sm:$0xff]  ;;  %v281_v15 = vld [vmem:[%s1463_s30 + $0x18] sm:$0xff]  ;;  %v298_v16 = vld [vmem:[%s1463_s30 + $0xa0] sm:$0xff]  ;;  %v348_v9 = vunpack.c.l.bf16 %v329_v1  ;;  %v364_v10 = vunpack.c.l.bf16 %v337_v3 }
  0x9d   : > { %860 = vmatprep.subr.bf16.mxu0 %v859_v8  ;;  %891 = vmatprep.subr.bf16.mxu1 %v859_v8  ;;  %v299_v17 = vld [vmem:[%s1463_s30 + $0xa8] sm:$0xff]  ;;  %v865_v18 = vpack.c.bf16 %v281_v15, %v280_v14  ;;  %v282_v20 = vld [vmem:[%s1463_s30 + $0x20] sm:$0xff]  ;;  %v300_v22 = vld [vmem:[%s1463_s30 + $0xb0] sm:$0xff] }
  0x9e   : > { %862 = vmatpush3.bf16.msra.mxu0 %v861_v12  ;;  %899 = vmatpush3.bf16.msra.mxu1 %v861_v12  ;;  %v867_v19 = vpack.c.bf16 %v299_v17, %v298_v16  ;;  %v283_v21 = vld [vmem:[%s1463_s30 + $0x28] sm:$0xff]  ;;  %v301_v23 = vld [vmem:[%s1463_s30 + $0xb8] sm:$0xff]  ;;  %v284_v26 = vld [vmem:[%s1463_s30 + $0x30] sm:$0xff] }
  0x9f   : > { %864 = vmatprep.subr.bf16.mxu0 %v863_v13  ;;  %892 = vmatprep.subr.bf16.mxu1 %v863_v13  ;;  %v869_v24 = vpack.c.bf16 %v283_v21, %v282_v20  ;;  %v871_v25 = vpack.c.bf16 %v301_v23, %v300_v22  ;;  %v285_v27 = vld [vmem:[%s1463_s30 + $0x38] sm:$0xff]  ;;  %v302_v28 = vld [vmem:[%s1463_s30 + $0xc0] sm:$0xff]  ;;  %v303_v29 = vld [vmem:[%s1463_s30 + $0xc8] sm:$0xff] }
  0xa0   : > { %v873_v30 = vpack.c.bf16 %v285_v27, %v284_v26  ;;  %v875_v31 = vpack.c.bf16 %v303_v29, %v302_v28  ;;  %v286_v32 = vld [vmem:[%s1463_s30 + $0x40] sm:$0xff]  ;;  %v287_v33 = vld [vmem:[%s1463_s30 + $0x48] sm:$0xff]  ;;  %v304_v34 = vld [vmem:[%s1463_s30 + $0xd0] sm:$0xff] }
  0xa1   : > { %v305_v35 = vld [vmem:[%s1463_s30 + $0xd8] sm:$0xff]  ;;  %v877_v36 = vpack.c.bf16 %v287_v33, %v286_v32  ;;  %v288_v38 = vld [vmem:[%s1463_s30 + $0x50] sm:$0xff]  ;;  %v306_v40 = vld [vmem:[%s1463_s30 + $0xe0] sm:$0xff] }
  0xa2   : > { %866 = vmatpush3.bf16.msra.mxu0 %v865_v18  ;;  %900 = vmatpush3.bf16.msra.mxu1 %v865_v18  ;;  %v879_v37 = vpack.c.bf16 %v305_v35, %v304_v34  ;;  %v289_v39 = vld [vmem:[%s1463_s30 + $0x58] sm:$0xff]  ;;  %v307_v41 = vld [vmem:[%s1463_s30 + $0xe8] sm:$0xff]  ;;  %v290_v44 = vld [vmem:[%s1463_s30 + $0x60] sm:$0xff] }
  0xa3   : > { %868 = vmatprep.subr.bf16.mxu0 %v867_v19  ;;  %893 = vmatprep.subr.bf16.mxu1 %v867_v19  ;;  %v881_v42 = vpack.c.bf16 %v289_v39, %v288_v38  ;;  %v883_v43 = vpack.c.bf16 %v307_v41, %v306_v40  ;;  %v291_v45 = vld [vmem:[%s1463_s30 + $0x68] sm:$0xff]  ;;  %v308_v46 = vld [vmem:[%s1463_s30 + $0xf0] sm:$0xff]  ;;  %v309_v47 = vld [vmem:[%s1463_s30 + $0xf8] sm:$0xff] }
  0xa4   : > { %v885_v48 = vpack.c.bf16 %v291_v45, %v290_v44  ;;  %v887_v49 = vpack.c.bf16 %v309_v47, %v308_v46  ;;  %v292_v50 = vld [vmem:[%s1463_s30 + $0x70] sm:$0xff]  ;;  %v293_v51 = vld [vmem:[%s1463_s30 + $0x78] sm:$0xff]  ;;  %v330_v7 = vld [vmem:[%s1438_s21 + $0x20] sm:$0xff] }
  0xa5   : > { %v889_v52 = vpack.c.bf16 %v293_v51, %v292_v50  ;;  %v338_v8 = vld [vmem:[%s1438_s21 + $0x60] sm:$0xff]  ;;  %v351_v11 = vunpack.c.h.bf16 %v330_v7  ;;  %v331_v13 = vld [vmem:[%s1438_s21 + $0x28] sm:$0xff]  ;;  %v350_v15 = vunpack.c.l.bf16 %v330_v7  ;;  %v332_v19 = vld [vmem:[%s1438_s21 + $0x30] sm:$0xff] }
  0xa6   : > { %870 = vmatpush3.bf16.msra.mxu0 %v869_v24  ;;  %901 = vmatpush3.bf16.msra.mxu1 %v869_v24  ;;  %v367_v12 = vunpack.c.h.bf16 %v338_v8  ;;  %v339_v14 = vld [vmem:[%s1438_s21 + $0x68] sm:$0xff]  ;;  %v366_v16 = vunpack.c.l.bf16 %v338_v8  ;;  %v353_v17 = vunpack.c.h.bf16 %v331_v13  ;;  %v340_v20 = vld [vmem:[%s1438_s21 + $0x70] sm:$0xff]  ;;  %v352_v21 = vunpack.c.l.bf16 %v331_v13  ;;  %v341_v26 = vld [vmem:[%s1438_s21 + $0x78] sm:$0xff] }
  0xa7   : > { %872 = vmatprep.subr.bf16.mxu0 %v871_v25  ;;  %894 = vmatprep.subr.bf16.mxu1 %v871_v25  ;;  %v369_v18 = vunpack.c.h.bf16 %v339_v14  ;;  %v368_v22 = vunpack.c.l.bf16 %v339_v14  ;;  %v355_v23 = vunpack.c.h.bf16 %v332_v19  ;;  %v371_v24 = vunpack.c.h.bf16 %v340_v20  ;;  %v333_v25 = vld [vmem:[%s1438_s21 + $0x38] sm:$0xff]  ;;  %v310_v35 = vld [vmem:[#allocation2] sm:$0xff]  ;;  %v311_v45 = vld [vmem:[#allocation2 + $0x8] sm:$0xff] }
  0xa8   : > { %v354_v27 = vunpack.c.l.bf16 %v332_v19  ;;  %v370_v28 = vunpack.c.l.bf16 %v340_v20  ;;  %v357_v29 = vunpack.c.h.bf16 %v333_v25  ;;  %v372_v32 = vunpack.c.l.bf16 %v341_v26  ;;  %v319_v47 = vld [vmem:[#allocation2 + $0x48] sm:$0xff]  ;;  %v313_v1 = vld [vmem:[#allocation2 + $0x18] sm:$0xff]  ;;  %v322_v13 = vld [vmem:[#allocation2 + $0x60] sm:$0xff] }
  0xaa   : > { %874 = vmatpush3.bf16.msra.mxu0 %v873_v30  ;;  %902 = vmatpush3.bf16.msra.mxu1 %v873_v30  ;;  %v373_v30 = vunpack.c.h.bf16 %v341_v26 }
  0xab   : > { %876 = vmatprep.subr.bf16.mxu0 %v875_v31  ;;  %895 = vmatprep.subr.bf16.mxu1 %v875_v31  ;;  %v356_v31 = vunpack.c.l.bf16 %v333_v25 }
  0xae   : > { %878 = vmatpush3.bf16.msra.mxu0 %v877_v36  ;;  %903 = vmatpush3.bf16.msra.mxu1 %v877_v36 }
  0xaf   : > { %880 = vmatprep.subr.bf16.mxu0 %v879_v37  ;;  %896 = vmatprep.subr.bf16.mxu1 %v879_v37  ;;  %v318_v37 = vld [vmem:[#allocation2 + $0x40] sm:$0xff] }
  0xb2   : > { %882 = vmatpush3.bf16.msra.mxu0 %v881_v42  ;;  %904 = vmatpush3.bf16.msra.mxu1 %v881_v42 }
  0xb3   : > { %884 = vmatprep.subr.bf16.mxu0 %v883_v43  ;;  %897 = vmatprep.subr.bf16.mxu1 %v883_v43 }
  0xb6   : > { %886 = vmatpush3.bf16.msra.mxu0 %v885_v48  ;;  %905 = vmatpush3.bf16.msra.mxu1 %v885_v48 }
  0xb7   : > { %888 = vmatprep.subr.bf16.mxu0 %v887_v49  ;;  %898 = vmatprep.subr.bf16.mxu1 %v887_v49 }
  0xba   : > { %890 = vmatpush3.bf16.msra.mxu0 %v889_v52  ;;  %906 = vmatpush3.bf16.msra.mxu1 %v889_v52 }
  0xbd   : > { %439 = vmatmul.mubr.f32.vlgmr.msra.gmra.mrb[0].mxu0 %v342_v55  ;;  %479 = vmatmul.mubr.f32.vlgmr.msra.gmra.mrb[0].mxu1 %v358_v56  ;;  %v312_v55 = vld [vmem:[#allocation2 + $0x10] sm:$0xff] }
  0xbe   : > { %443 = vmatprep.mubr.f32.mxu0 %v345_v57  ;;  %483 = vmatprep.mubr.f32.mxu1 %v361_v58  ;;  %v320_v57 = vld [vmem:[#allocation2 + $0x50] sm:$0xff] }
  0xc1   : > { %444 = vmatmul.mubr.f32.gmra.mrb[2].mxu0 %v344_v61  ;;  %484 = vmatmul.mubr.f32.gmra.mrb[2].mxu1 %v360_v62 }
  0xc2   : > { %448 = vmatprep.mubr.f32.mxu0 %v347_v63  ;;  %488 = vmatprep.mubr.f32.mxu1 %v363_v0 }
  0xc5   : > { %449 = vmatmul.mubr.f32.gmra.mrb[4].mxu0 %v346_v2  ;;  %489 = vmatmul.mubr.f32.gmra.mrb[4].mxu1 %v362_v4  ;;  %v321_v2 = vld [vmem:[#allocation2 + $0x58] sm:$0xff] }
  0xc6   : > { %453 = vmatprep.mubr.f32.mxu0 %v349_v5  ;;  %493 = vmatprep.mubr.f32.mxu1 %v365_v6 }
  0xc9   : > { %454 = vmatmul.mubr.f32.gmra.mrb[6].mxu0 %v348_v9  ;;  %494 = vmatmul.mubr.f32.gmra.mrb[6].mxu1 %v364_v10 }
  0xca   : > { %458 = vmatprep.mubr.f32.mxu0 %v351_v11  ;;  %498 = vmatprep.mubr.f32.mxu1 %v367_v12  ;;  %v314_v11 = vld [vmem:[#allocation2 + $0x20] sm:$0xff] }
  0xcd   : > { %459 = vmatmul.mubr.f32.gmra.mrb[8].mxu0 %v350_v15  ;;  %499 = vmatmul.mubr.f32.gmra.mrb[8].mxu1 %v366_v16 }
  0xce   : > { %463 = vmatprep.mubr.f32.mxu0 %v353_v17  ;;  %503 = vmatprep.mubr.f32.mxu1 %v369_v18 }
  0xd1   : > { %464 = vmatmul.mubr.f32.gmra.mrb[10].mxu0 %v352_v21  ;;  %504 = vmatmul.mubr.f32.gmra.mrb[10].mxu1 %v368_v22  ;;  %v315_v21 = vld [vmem:[#allocation2 + $0x28] sm:$0xff] }
  0xd2   : > { %468 = vmatprep.mubr.f32.mxu0 %v355_v23  ;;  %508 = vmatprep.mubr.f32.mxu1 %v371_v24  ;;  %v323_v23 = vld [vmem:[#allocation2 + $0x68] sm:$0xff] }
  0xd5   : > { %469 = vmatmul.mubr.f32.gmra.mrb[12].mxu0 %v354_v27  ;;  %509 = vmatmul.mubr.f32.gmra.mrb[12].mxu1 %v370_v28 }
  0xd6   : > { %473 = vmatprep.mubr.f32.mxu0 %v357_v29  ;;  %513 = vmatprep.mubr.f32.mxu1 %v373_v30 }
  0xd9   : > { %474 = vmatmul.mubr.f32.gmra.mrb[14].mxu0 %v356_v31  ;;  %514 = vmatmul.mubr.f32.gmra.mrb[14].mxu1 %v372_v32  ;;  %v316_v31 = vld [vmem:[#allocation2 + $0x30] sm:$0xff] }
 0x190   : > { %v811_v33 = vpop.f32.mrb[0].mxu0  ;;  %v835_v34 = vpop.f32.mrb[0].mxu1 }
 0x191   : > { %v812_v36 = vpop.f32.mrb[1].mxu0  ;;  %v836_v38 = vpop.f32.mrb[1].mxu1 }
 0x192   : > { %v813_v39 = vadd.f32 %v812_v36, %v811_v33  ;;  %v837_v40 = vadd.f32 %v836_v38, %v835_v34  ;;  %v324_v33 = vld [vmem:[#allocation2 + $0x70] sm:$0xff] }
 0x194   : > { %v519_v41 = vadd.f32 %v813_v39, %v310_v35  ;;  %v527_v42 = vadd.f32 %v837_v40, %v318_v37  ;;  %v814_v43 = vpop.f32.mrb[2].mxu0  ;;  %v838_v44 = vpop.f32.mrb[2].mxu1 }
 0x195   : > { %v815_v46 = vpop.f32.mrb[3].mxu0  ;;  %v839_v48 = vpop.f32.mrb[3].mxu1 }
 0x196   : > { %535 = vst [vmem:[#allocation2] sm:$0xff] %v519_v41  ;;  %543 = vst [vmem:[#allocation2 + $0x40] sm:$0xff] %v527_v42  ;;  %v816_v49 = vadd.f32 %v815_v46, %v814_v43  ;;  %v840_v50 = vadd.f32 %v839_v48, %v838_v44  ;;  %v317_v41 = vld [vmem:[#allocation2 + $0x38] sm:$0xff] }
 0x197   : > { %v325_v43 = vld [vmem:[#allocation2 + $0x78] sm:$0xff] }
 0x198   : > { %v520_v51 = vadd.f32 %v816_v49, %v311_v45  ;;  %v528_v52 = vadd.f32 %v840_v50, %v319_v47  ;;  %v817_v53 = vpop.f32.mrb[4].mxu0  ;;  %v841_v54 = vpop.f32.mrb[4].mxu1 }
 0x199   : > { %v818_v56 = vpop.f32.mrb[5].mxu0  ;;  %v842_v58 = vpop.f32.mrb[5].mxu1 }
 0x19a   : > { %536 = vst [vmem:[#allocation2 + $0x8] sm:$0xff] %v520_v51  ;;  %544 = vst [vmem:[#allocation2 + $0x48] sm:$0xff] %v528_v52  ;;  %v819_v59 = vadd.f32 %v818_v56, %v817_v53  ;;  %v843_v60 = vadd.f32 %v842_v58, %v841_v54 }
 0x19c   : > { %v521_v61 = vadd.f32 %v819_v59, %v312_v55  ;;  %v529_v62 = vadd.f32 %v843_v60, %v320_v57  ;;  %v820_v63 = vpop.f32.mrb[6].mxu0  ;;  %v844_v0 = vpop.f32.mrb[6].mxu1 }
 0x19d   : > { %v821_v3 = vpop.f32.mrb[7].mxu0  ;;  %v845_v4 = vpop.f32.mrb[7].mxu1 }
 0x19e   : > { %537 = vst [vmem:[#allocation2 + $0x10] sm:$0xff] %v521_v61  ;;  %545 = vst [vmem:[#allocation2 + $0x50] sm:$0xff] %v529_v62  ;;  %v822_v5 = vadd.f32 %v821_v3, %v820_v63  ;;  %v846_v6 = vadd.f32 %v845_v4, %v844_v0 }
 0x1a0   : > { %v522_v7 = vadd.f32 %v822_v5, %v313_v1  ;;  %v530_v8 = vadd.f32 %v846_v6, %v321_v2  ;;  %v823_v9 = vpop.f32.mrb[8].mxu0  ;;  %v847_v10 = vpop.f32.mrb[8].mxu1 }
 0x1a1   : > { %v824_v12 = vpop.f32.mrb[9].mxu0  ;;  %v848_v14 = vpop.f32.mrb[9].mxu1 }
 0x1a2   : > { %538 = vst [vmem:[#allocation2 + $0x18] sm:$0xff] %v522_v7  ;;  %546 = vst [vmem:[#allocation2 + $0x58] sm:$0xff] %v530_v8  ;;  %v825_v15 = vadd.f32 %v824_v12, %v823_v9  ;;  %v849_v16 = vadd.f32 %v848_v14, %v847_v10 }
 0x1a4   : > { %v523_v17 = vadd.f32 %v825_v15, %v314_v11  ;;  %v531_v18 = vadd.f32 %v849_v16, %v322_v13  ;;  %v826_v19 = vpop.f32.mrb[10].mxu0  ;;  %v850_v20 = vpop.f32.mrb[10].mxu1 }
 0x1a5   : > { %v827_v22 = vpop.f32.mrb[11].mxu0  ;;  %v851_v24 = vpop.f32.mrb[11].mxu1 }
 0x1a6   : > { %539 = vst [vmem:[#allocation2 + $0x20] sm:$0xff] %v523_v17  ;;  %547 = vst [vmem:[#allocation2 + $0x60] sm:$0xff] %v531_v18  ;;  %v828_v25 = vadd.f32 %v827_v22, %v826_v19  ;;  %v852_v26 = vadd.f32 %v851_v24, %v850_v20 }
 0x1a8   : > { %v524_v27 = vadd.f32 %v828_v25, %v315_v21  ;;  %v532_v28 = vadd.f32 %v852_v26, %v323_v23  ;;  %v829_v29 = vpop.f32.mrb[12].mxu0  ;;  %v853_v30 = vpop.f32.mrb[12].mxu1 }
 0x1a9   : > { %v830_v32 = vpop.f32.mrb[13].mxu0  ;;  %v854_v34 = vpop.f32.mrb[13].mxu1 }
 0x1aa   : > { %540 = vst [vmem:[#allocation2 + $0x28] sm:$0xff] %v524_v27  ;;  %548 = vst [vmem:[#allocation2 + $0x68] sm:$0xff] %v532_v28  ;;  %v831_v35 = vadd.f32 %v830_v32, %v829_v29  ;;  %v855_v36 = vadd.f32 %v854_v34, %v853_v30 }
 0x1ac   : > { %v525_v37 = vadd.f32 %v831_v35, %v316_v31  ;;  %v533_v38 = vadd.f32 %v855_v36, %v324_v33  ;;  %v832_v39 = vpop.f32.mrb[14].mxu0  ;;  %v856_v40 = vpop.f32.mrb[14].mxu1 }
 0x1ad   : > { %v833_v42 = vpop.f32.mrb[15].mxu0  ;;  %v857_v44 = vpop.f32.mrb[15].mxu1 }
 0x1ae   : > { %541 = vst [vmem:[#allocation2 + $0x30] sm:$0xff] %v525_v37  ;;  %549 = vst [vmem:[#allocation2 + $0x70] sm:$0xff] %v533_v38  ;;  %v834_v45 = vadd.f32 %v833_v42, %v832_v39  ;;  %v858_v46 = vadd.f32 %v857_v44, %v856_v40 }
 0x1b0   : > { %v526_v47 = vadd.f32 %v834_v45, %v317_v41  ;;  %v534_v48 = vadd.f32 %v858_v46, %v325_v43 }
 0x1b2   : > { %542 = vst [vmem:[#allocation2 + $0x38] sm:$0xff] %v526_v47  ;;  %550 = vst [vmem:[#allocation2 + $0x78] sm:$0xff] %v534_v48 }
 0x1b3 PF: > { %s771_s22 = sshll.u32 %s1201_s8, 7  ;;  %s572_s19 = sld [smem:[#allocation4]]  ;;  %v573_v49 = vld [vmem:[#allocation2] sm:$0xff]  ;;  %v574_v50 = vld [vmem:[#allocation2 + $0x8] sm:$0xff]  ;;  %v575_v51 = vld [vmem:[#allocation2 + $0x10] sm:$0xff] }
 0x1b4   : > { %v576_v52 = vld [vmem:[#allocation2 + $0x18] sm:$0xff]  ;;  %v577_v53 = vld [vmem:[#allocation2 + $0x20] sm:$0xff]  ;;  %v578_v54 = vld [vmem:[#allocation2 + $0x28] sm:$0xff]  ;;  %s1514_s0 = scalar_lea.vmem [#allocation10], %s771_s22  ;;  %s778_s24 = sshll.u32 %s1201_s8, 11 }
 0x1b5   : > { %v556_v55 = vld [vmem:[%s1514_s0] sm:$0xff]  ;;  %v557_v56 = vld [vmem:[%s1514_s0 + $0x8] sm:$0xff]  ;;  %v558_v57 = vld [vmem:[%s1514_s0 + $0x10] sm:$0xff]  ;;  %s652_s25 = sshll.u32 %s1452_s13, 4  ;;  %s1545_s20 = scalar_lea.hbm %s1619_s5, %s778_s24  ;;  %s1547_s25 = int_to_ptr.vmem [resolvable:$true] %s652_s25 }
 0x1b6   : > { %v559_v58 = vld [vmem:[%s1514_s0 + $0x18] sm:$0xff]  ;;  %v579_v59 = vld [vmem:[#allocation2 + $0x30] sm:$0xff]  ;;  %v560_v62 = vld [vmem:[%s1514_s0 + $0x20] sm:$0xff]  ;;  %s1559_s26 = scalar_lea.sflag [#allocation9], %s229_s29  ;;  %s1097_s12 = scalar_lea.vmem %s1547_s25, 2048 }
 0x1b7   : > { %v561_v63 = vld [vmem:[%s1514_s0 + $0x28] sm:$0xff]  ;;  %v562_v0 = vld [vmem:[%s1514_s0 + $0x30] sm:$0xff]  ;;  %v563_v5 = vld [vmem:[%s1514_s0 + $0x38] sm:$0xff]  ;;  %p1098_p13 = scmp.ne.s32.totalorder %s1547_s25, %s1097_s12  ;;  %p1651_p3 = scmp.ne.s32.totalorder %s1637_s15, 0 }
 0x1b8   : > { %v581_v6 = vld [vmem:[#allocation2 + $0x40] sm:$0xff]  ;;  %v582_v7 = vld [vmem:[#allocation2 + $0x48] sm:$0xff]  ;;  %v566_v14 = vld [vmem:[%s1514_s0 + $0x50] sm:$0xff]  ;;  %s1218_s11 = smov [#allocation12]  }
 0x1b9   : > { %v580_v60 = vld [vmem:[#allocation2 + $0x38] sm:$0xff]  ;;  %v589_v61 = vstv %s572_s19  ;;  %v564_v12 = vld [vmem:[%s1514_s0 + $0x40] sm:$0xff]  ;;  %v565_v13 = vld [vmem:[%s1514_s0 + $0x48] sm:$0xff]  ;;  %p1099_p5 = pnand %p1098_p13, %p1651_p3  ;;  %s1101_s10 = sshll.u32 %s1218_s11, 4  ;;  %s1102_s10 = int_to_ptr.vmem [resolvable:$false] %s1101_s10 }
 0x1ba   : > { %v590_v1 = vmul.f32 %v589_v61, %v573_v49  ;;  %v591_v3 = vmul.f32 %v589_v61, %v574_v50  ;;  %v592_v2 = vmul.f32 %v589_v61, %v575_v51  ;;  %v593_v4 = vmul.f32 %v589_v61, %v576_v52  ;;  %v583_v15 = vld [vmem:[#allocation2 + $0x50] sm:$0xff]  ;;  %v584_v16 = vld [vmem:[#allocation2 + $0x58] sm:$0xff]  ;;  %v585_v21 = vld [vmem:[#allocation2 + $0x60] sm:$0xff]  ;;  %s1103_s21 = scalar_lea.vmem %s1102_s10, 4096  ;;  %p1104_p9 = scmp.lt.s32.totalorder %s1547_s25, %s1102_s10 }
 0x1bb   : > { %v594_v8 = vmul.f32 %v589_v61, %v577_v53  ;;  %v595_v9 = vmul.f32 %v589_v61, %v578_v54  ;;  %v596_v10 = vmul.f32 %v589_v61, %v579_v59  ;;  %v597_v11 = vmul.f32 %v589_v61, %v580_v60  ;;  %v586_v22 = vld [vmem:[#allocation2 + $0x68] sm:$0xff]  ;;  %v587_v23 = vld [vmem:[#allocation2 + $0x70] sm:$0xff]  ;;  %v567_v28 = vld [vmem:[%s1514_s0 + $0x58] sm:$0xff]  ;;  %p1100_p7 = pneg %p1099_p5  ;;  %p1105_p12 = scmp.lt.s32.totalorder %s1103_s21, %s1097_s12 }
 0x1bc   : > { %v606_v17 = vadd.f32 %v590_v1, %v556_v55  ;;  %v607_v18 = vadd.f32 %v591_v3, %v557_v56  ;;  %v608_v19 = vadd.f32 %v592_v2, %v558_v57  ;;  %v609_v20 = vadd.f32 %v593_v4, %v559_v58  ;;  %v568_v29 = vld [vmem:[%s1514_s0 + $0x60] sm:$0xff]  ;;  %v588_v30 = vld [vmem:[#allocation2 + $0x78] sm:$0xff]  ;;  %v569_v35 = vld [vmem:[%s1514_s0 + $0x68] sm:$0xff] }
 0x1bd   : > { %v610_v24 = vadd.f32 %v594_v8, %v560_v62  ;;  %v611_v25 = vadd.f32 %v595_v9, %v561_v63  ;;  %v612_v26 = vadd.f32 %v596_v10, %v562_v0  ;;  %v613_v27 = vadd.f32 %v597_v11, %v563_v5  ;;  %v570_v36 = vld [vmem:[%s1514_s0 + $0x70] sm:$0xff]  ;;  %v571_v37 = vld [vmem:[%s1514_s0 + $0x78] sm:$0xff]  ;;  %p1106_p0 = por %p1105_p12, %p1104_p9 }
 0x1be   : > { %622 = vst [vmem:[%s1452_s13] sm:$0xff] %v606_v17  ;;  %623 = vst [vmem:[%s1452_s13 + $0x8] sm:$0xff] %v607_v18  ;;  %v598_v31 = vmul.f32 %v589_v61, %v581_v6  ;;  %v599_v32 = vmul.f32 %v589_v61, %v582_v7  ;;  %v600_v33 = vmul.f32 %v589_v61, %v583_v15 }
 0x1bf   : > { %624 = vst [vmem:[%s1452_s13 + $0x10] sm:$0xff] %v608_v19  ;;  %625 = vst [vmem:[%s1452_s13 + $0x18] sm:$0xff] %v609_v20  ;;  %v601_v34 = vmul.f32 %v589_v61, %v584_v16  ;;  %v602_v38 = vmul.f32 %v589_v61, %v585_v21  ;;  %v603_v39 = vmul.f32 %v589_v61, %v586_v22  ;;  %p1107_p2 = pnand %p1106_p0, %p1100_p7 }
 0x1c0   : > { %626 = vst [vmem:[%s1452_s13 + $0x20] sm:$0xff] %v610_v24  ;;  %627 = vst [vmem:[%s1452_s13 + $0x28] sm:$0xff] %v611_v25  ;;  %v604_v40 = vmul.f32 %v589_v61, %v587_v23  ;;  %v605_v41 = vmul.f32 %v589_v61, %v588_v30  ;;  %v614_v42 = vadd.f32 %v598_v31, %v564_v12 }
 0x1c1   : > { %628 = vst [vmem:[%s1452_s13 + $0x30] sm:$0xff] %v612_v26  ;;  %629 = vst [vmem:[%s1452_s13 + $0x38] sm:$0xff] %v613_v27  ;;  %v615_v43 = vadd.f32 %v599_v32, %v565_v13  ;;  %v616_v44 = vadd.f32 %v600_v33, %v566_v14  ;;  %v617_v45 = vadd.f32 %v601_v34, %v567_v28 }
 0x1c2   : > { %v618_v46 = vadd.f32 %v602_v38, %v568_v29  ;;  %v619_v47 = vadd.f32 %v603_v39, %v569_v35  ;;  %v620_v48 = vadd.f32 %v604_v40, %v570_v36  ;;  %v621_v49 = vadd.f32 %v605_v41, %v571_v37  ;;  %630 = vst [vmem:[%s1452_s13 + $0x40] sm:$0xff] %v614_v42 }
 0x1c3   : > { %631 = vst [vmem:[%s1452_s13 + $0x48] sm:$0xff] %v615_v43  ;;  %632 = vst [vmem:[%s1452_s13 + $0x50] sm:$0xff] %v616_v44 }
 0x1c4   : > { %633 = vst [vmem:[%s1452_s13 + $0x58] sm:$0xff] %v617_v45  ;;  %634 = vst [vmem:[%s1452_s13 + $0x60] sm:$0xff] %v618_v46 }
 0x1c5   : > { %635 = vst [vmem:[%s1452_s13 + $0x68] sm:$0xff] %v619_v47  ;;  %636 = vst [vmem:[%s1452_s13 + $0x70] sm:$0xff] %v620_v48 }
 0x1c6   : > { %637 = vst [vmem:[%s1452_s13 + $0x78] sm:$0xff] %v621_v49 }
 0x1c7   : > { %1110 = shalt.err (!%p1107_p2)
}
 0x1c8   : > { %s1111_s29 = scalar_lea.hbm %s1545_s20, 2048  ;;  %s1115_s13 = scalar_lea.hbm %s1619_s5, 4096 }
 0x1c9   : > { %p1112_p6 = scmp.ne.s32.totalorder %s1545_s20, %s1111_s29  ;;  %p1116_p4 = scmp.lt.u32.totalorder %s1545_s20, %s1619_s5 }
 0x1ca   : > { %p1117_p11 = scmp.lt.u32.totalorder %s1115_s13, %s1111_s29  ;;  %p1119_p13 = scmp.lt.u32.totalorder %s1111_s29, %s1545_s20 }
 0x1cb   : > { %p1113_p8 = pnand %p1112_p6, %p1651_p3 }
 0x1cc   : > { %p1118_p10 = por %p1117_p11, %p1116_p4 }
 0x1cd   : > { %p1114_p1 = pneg %p1113_p8 }
 0x1ce   : > { %p1120_p5 = por %p1119_p13, %p1118_p10 }
 0x1d0   : > { %p1121_p7 = pnand %p1120_p5, %p1114_p1 }
 0x1d2   : > { %1124 = shalt.err (!%p1121_p7)
}
 0x1d3   : > { %s1219_s27 = smov 128   ;;  %s1220_s30 = smov 8  }
 0x1d4   : > { %915 = dma.vmem_to_hbm [thread:$0]  (%p1651_p3), %s1547_s25, 2048, %s1545_s20, %s1559_s26, %s1219_s27, %s1219_s27, %s1220_s30  }
 0x1d5 PF: > { %s1652_s22 = sld [smem:[#allocation20_spill]]  ;;  %s667_s19 = sand.u32 1, %s1177_s2  }
 0x1d6   : > { %p1653_p9 = scmp.ne.s32.totalorder %s1638_s16, 0  ;;  %s668_s0 = scalar_lea.sflag [#allocation9], %s667_s19 }
 0x1db   : > { %p1654_p12 = scmp.ge.s32.totalorder %s1652_s22, 2 }
 0x1dd   : > { %p928_p0 = pnand %p1654_p12, %p1653_p9 }
 0x1df   : > { %1172 = dma.done.wait (!%p928_p0), %s668_s0, 2048  }
 0x1e0   : > { %1174 = vsyncadd (!%p928_p0), %s668_s0, 4294965248  ;;  %s33_s10 = sadd.s32 1, %s1652_s22   ;;  %s1655_s24 = sld [smem:[#allocation19_spill]] }
 0x1e1   : > { %p30_p2 = scmp.ge.s32.totalorder %s33_s10, 4   ;;  %s1656_s29 = sld [smem:[#allocation22_spill]] }
 0x1e2   : > { %s1657_s15 = sld [smem:[#allocation21_spill]]  ;;  %s1658_s2 = smov %s1181_s28 }
 0x1e3   : > { %s1660_s30 = smov %s1193_s6  ;;  %s1661_s6 = smov %s1197_s7 }
 0x1e4   : > { %s1662_s7 = smov %s1392_s4  ;;  %s1663_s8 = smov %s1205_s9 }
 0x1e5   :  { %32 = sbr.rel (!%p30_p2) target bundleno = 35 (0x23), region = 91 }
 0x1e6   : > { %s1659_s28 = smov %s1655_s24 }
 0x1e8   : > { %s1664_s9 = smov %s1657_s15 }
 0x1ec   :  { %673 = vsyncpa [#allocation8], 1 }
 0x1ed   :  { %675 = vsyncpa [#allocation8 + $0x1], 1 }
 0x1ee   :  { %676 = vsyncpa [#allocation11], 1 }
 0x1ef   :  { %677 = vsyncpa [#allocation9], 1 }
 0x1f0   :  { %679 = vsyncpa [#allocation9 + $0x1], 1 }

</bundles_post_ra>
